<compile_context>
chip_gen: v6e
topology: v6e:2x2x1
jax: 0.10.0
libtpu: 0.0.40
codegen_flags: <defaults>
</compile_context>

<pallas_src>
import jax
import jax.numpy as jnp
from jax.experimental import pallas as pl
from jax.experimental.pallas import tpu as pltpu

B = 2              # batch (graphs)
N_NODES = 4        # graph nodes (e.g. EEG channels)
IN_FEATURES = 16   # GraphConv in_features
OUT_FEATURES = 32  # GraphConv out_features
LN_EPS = 1e-5      # nn.LayerNorm default eps


def _graph_conv_kernel(adj_ref, x_ref, wt_ref, p_ref, o_ref, adj_bd_ref):
    """Fused GraphConv: LayerNorm(adj @ x @ W^T + bias), batch folded.

    adj_ref    : (B, N, N)     per-graph adjacency
    x_ref      : (B*N, Fin)    node features, batch flattened into rows
    wt_ref     : (Fin, Fout)   linear weight, pre-transposed
    p_ref      : (3, Fout)     packed [bias; gamma; beta]
    o_ref      : (B*N, Fout)   output (single lane store)
    adj_bd_ref : (B*N, B*N)    VMEM scratch: block-diagonal adjacency
    """
    bsz, n, _ = adj_ref.shape
    fout = p_ref.shape[1]

    # --- MXU push #1: Linear over all B*N rows at once (reassociated).
    xw = jnp.dot(x_ref[...], wt_ref[...],
                 preferred_element_type=jnp.float32)             # (B*N, Fout)

    # --- Build block-diagonal adjacency in scratch so the batched torch.bmm
    #     collapses into a single (B*N, B*N) @ (B*N, Fout) matmul.
    adj_bd_ref[...] = jnp.zeros_like(adj_bd_ref)
    for bi in range(bsz):                         # static unroll, B is tiny
        adj_bd_ref[bi * n:(bi + 1) * n, bi * n:(bi + 1) * n] = adj_ref[bi]

    bias = p_ref[0:1, :]                          # (1, Fout)
    gamma = p_ref[1:2, :]
    beta = p_ref[2:3, :]

    # --- MXU push #2: batched aggregation + bias.
    y = jnp.dot(adj_bd_ref[...], xw,
                preferred_element_type=jnp.float32) + bias       # (B*N, Fout)

    # --- Single-pass LayerNorm statistics: var = E[y^2] - mean^2.
    inv_f = jnp.float32(1.0 / fout)
    s1 = jnp.sum(y, axis=-1, keepdims=True)
    s2 = jnp.sum(y * y, axis=-1, keepdims=True)
    mean = s1 * inv_f
    var = s2 * inv_f - mean * mean
    inv_std = jax.lax.rsqrt(var + LN_EPS)                         # EUP slot

    # --- One store of the whole result.
    # TODO(synk): a (B, N*Fout)=(2,128) lane-dense output would make this an
    # unmasked full-128-lane vst; kept (B*N, Fout) to avoid an in-kernel
    # lane-dim reshape.
    o_ref[...] = (y - mean) * (inv_std * gamma) + beta


def graph_conv(x, adj, w_t, ln_params):
    """GraphConv forward.
    x: (B, N, Fin), adj: (B, N, N), w_t: (Fin, Fout), ln_params: (3, Fout)."""
    bsz, n, fin = x.shape
    fout = w_t.shape[1]
    vmem = pltpu.MemorySpace.VMEM
    flops = 2 * (bsz * n) * fin * fout + 2 * (bsz * n) * (bsz * n) * fout
    bytes_accessed = 4 * (adj.size + x.size + w_t.size + ln_params.size
                          + bsz * n * fout)
    out = pl.pallas_call(
        _graph_conv_kernel,
        out_shape=jax.ShapeDtypeStruct((bsz * n, fout), jnp.float32),
        in_specs=[pl.BlockSpec(memory_space=vmem)] * 4,
        out_specs=pl.BlockSpec(memory_space=vmem),
        scratch_shapes=[pltpu.VMEM((bsz * n, bsz * n), jnp.float32)],
        cost_estimate=pl.CostEstimate(
            flops=flops,
            transcendentals=bsz * n,
            bytes_accessed=bytes_accessed),
    )(adj, x.reshape(bsz * n, fin), w_t, ln_params)
    # Contiguous view reshapes (free) back to the module's (B, N, Fout).
    return out.reshape(bsz, n, fout)


def graph_conv_reference(x, adj, w_t, bias, gamma, beta):
    """Pure-JAX reference matching the PyTorch module (original op order)."""
    ax = jnp.einsum('bij,bjf->bif', adj, x)
    y = ax @ w_t + bias
    mean = jnp.mean(y, axis=-1, keepdims=True)
    var = jnp.mean((y - mean) ** 2, axis=-1, keepdims=True)
    return (y - mean) * jax.lax.rsqrt(var + LN_EPS) * gamma + beta


if __name__ == "__main__":
    key = jax.random.PRNGKey(0)
    kx, ka, kw, kb, kg, kbe = jax.random.split(key, 6)

    # Inputs consistent with the module's forward(x, adj).
    x = jax.random.normal(kx, (B, N_NODES, IN_FEATURES), jnp.float32)
    adj = jax.nn.softmax(
        jax.random.normal(ka, (B, N_NODES, N_NODES), jnp.float32), axis=-1)

    # Parameters built ONCE at construction time, already f32 / pre-shaped:
    #   * nn.Linear weight stored pre-transposed (Fin, Fout),
    #   * bias / LayerNorm gamma / beta packed into a single (3, Fout) operand.
    w_t = jax.random.normal(kw, (IN_FEATURES, OUT_FEATURES), jnp.float32) * 0.05
    bias = 0.1 * jax.random.normal(kb, (OUT_FEATURES,), jnp.float32)
    gamma = 1.0 + 0.1 * jax.random.normal(kg, (OUT_FEATURES,), jnp.float32)
    beta = 0.1 * jax.random.normal(kbe, (OUT_FEATURES,), jnp.float32)
    ln_params = jnp.stack([bias, gamma, beta], axis=0)      # (3, Fout)

    fwd = jax.jit(graph_conv)
    out = jax.block_until_ready(fwd(x, adj, w_t, ln_params))

    ref = graph_conv_reference(x, adj, w_t, bias, gamma, beta)
    assert out.shape == (B, N_NODES, OUT_FEATURES), out.shape
    assert bool(jnp.all(jnp.isfinite(out)))
    max_err = float(jnp.max(jnp.abs(out - ref)))
    assert bool(jnp.allclose(out, ref, rtol=1e-4, atol=1e-5)), max_err
    print("KERNEL_OK")
</pallas_src>

<mosaic_0001>
module attributes {stable_mosaic.version = 11 : i64} {
  func.func @_graph_conv_kernel(%arg0: memref<2x4x4xf32, #tpu.memory_space<vmem>>, %arg1: memref<8x16xf32, #tpu.memory_space<vmem>>, %arg2: memref<16x32xf32, #tpu.memory_space<vmem>>, %arg3: memref<3x32xf32, #tpu.memory_space<vmem>>, %arg4: memref<8x32xf32, #tpu.memory_space<vmem>>, %arg5: memref<8x8xf32, #tpu.memory_space<vmem>>) attributes {dimension_semantics = [], scalar_prefetch = 0 : i64, scratch_operands = 1 : i64, tpu.core_type = #tpu.core_type<tc>} {
    %c0 = arith.constant 0 : index
    %c0_0 = arith.constant 0 : index
    %0 = vector.load %arg1[%c0, %c0_0] : memref<8x16xf32, #tpu.memory_space<vmem>>, vector<8x16xf32>
    %c0_1 = arith.constant 0 : index
    %c0_2 = arith.constant 0 : index
    %1 = vector.load %arg2[%c0_1, %c0_2] : memref<16x32xf32, #tpu.memory_space<vmem>>, vector<16x32xf32>
    %cst = arith.constant dense<0.000000e+00> : vector<8x32xf32>
    %2 = tpu.matmul %0, %1, %cst {dimension_numbers = #tpu.dot_dimension_numbers<[1], [0], [0], [1], [0, 0, 1, 1], [], []>} : vector<8x16xf32>, vector<16x32xf32>, vector<8x32xf32> -> vector<8x32xf32>
    %cst_3 = arith.constant 0.000000e+00 : f32
    %3 = vector.broadcast %cst_3 : f32 to vector<8x8xf32>
    %c0_4 = arith.constant 0 : index
    %c0_5 = arith.constant 0 : index
    %4 = vector.load %arg5[%c0_4, %c0_5] : memref<8x8xf32, #tpu.memory_space<vmem>>, vector<8x8xf32>
    tpu.vector_store %arg5[%c0_4, %c0_5], %3 {strides = array<i32>} : memref<8x8xf32, #tpu.memory_space<vmem>>, vector<8x8xf32>,
    %c0_6 = arith.constant 0 : index
    %c0_7 = arith.constant 0 : index
    %c0_8 = arith.constant 0 : index
    %5 = vector.load %arg0[%c0_6, %c0_7, %c0_8] : memref<2x4x4xf32, #tpu.memory_space<vmem>>, vector<1x4x4xf32>
    %6 = vector.shape_cast %5 : vector<1x4x4xf32> to vector<4x4xf32>
    %c0_9 = arith.constant 0 : index
    %c0_10 = arith.constant 0 : index
    %7 = vector.load %arg5[%c0_9, %c0_10] : memref<8x8xf32, #tpu.memory_space<vmem>>, vector<4x4xf32>
    tpu.vector_store %arg5[%c0_9, %c0_10], %6 {strides = array<i32>} : memref<8x8xf32, #tpu.memory_space<vmem>>, vector<4x4xf32>,
    %c1 = arith.constant 1 : index
    %c0_11 = arith.constant 0 : index
    %c0_12 = arith.constant 0 : index
    %8 = vector.load %arg0[%c1, %c0_11, %c0_12] : memref<2x4x4xf32, #tpu.memory_space<vmem>>, vector<1x4x4xf32>
    %9 = vector.shape_cast %8 : vector<1x4x4xf32> to vector<4x4xf32>
    %c4 = arith.constant 4 : index
    %c4_13 = arith.constant 4 : index
    %10 = vector.load %arg5[%c4, %c4_13] : memref<8x8xf32, #tpu.memory_space<vmem>>, vector<4x4xf32>
    tpu.vector_store %arg5[%c4, %c4_13], %9 {strides = array<i32>} : memref<8x8xf32, #tpu.memory_space<vmem>>, vector<4x4xf32>,
    %c0_14 = arith.constant 0 : index
    %c0_15 = arith.constant 0 : index
    %11 = vector.load %arg3[%c0_14, %c0_15] : memref<3x32xf32, #tpu.memory_space<vmem>>, vector<1x32xf32>
    %c1_16 = arith.constant 1 : index
    %c0_17 = arith.constant 0 : index
    %12 = vector.load %arg3[%c1_16, %c0_17] : memref<3x32xf32, #tpu.memory_space<vmem>>, vector<1x32xf32>
    %c2 = arith.constant 2 : index
    %c0_18 = arith.constant 0 : index
    %13 = vector.load %arg3[%c2, %c0_18] : memref<3x32xf32, #tpu.memory_space<vmem>>, vector<1x32xf32>
    %c0_19 = arith.constant 0 : index
    %c0_20 = arith.constant 0 : index
    %14 = vector.load %arg5[%c0_19, %c0_20] : memref<8x8xf32, #tpu.memory_space<vmem>>, vector<8x8xf32>
    %cst_21 = arith.constant dense<0.000000e+00> : vector<8x32xf32>
    %15 = tpu.matmul %14, %2, %cst_21 {dimension_numbers = #tpu.dot_dimension_numbers<[1], [0], [0], [1], [0, 0, 1, 1], [], []>} : vector<8x8xf32>, vector<8x32xf32>, vector<8x32xf32> -> vector<8x32xf32>
    %16 = vector.broadcast %11 : vector<1x32xf32> to vector<8x32xf32>
    %17 = arith.addf %15, %16 : vector<8x32xf32>
    %cst_22 = arith.constant dense<0.000000e+00> : vector<8xf32>
    %18 = vector.multi_reduction <add>, %17, %cst_22 [1] : vector<8x32xf32> to vector<8xf32>
    %19 = vector.shape_cast %18 : vector<8xf32> to vector<8x1xf32>
    %20 = arith.mulf %17, %17 : vector<8x32xf32>
    %cst_23 = arith.constant dense<0.000000e+00> : vector<8xf32>
    %21 = vector.multi_reduction <add>, %20, %cst_23 [1] : vector<8x32xf32> to vector<8xf32>
    %22 = vector.shape_cast %21 : vector<8xf32> to vector<8x1xf32>
    %cst_24 = arith.constant 3.125000e-02 : f32
    %23 = vector.broadcast %cst_24 : f32 to vector<8x1xf32>
    %24 = arith.mulf %19, %23 : vector<8x1xf32>
    %cst_25 = arith.constant 3.125000e-02 : f32
    %25 = vector.broadcast %cst_25 : f32 to vector<8x1xf32>
    %26 = arith.mulf %22, %25 : vector<8x1xf32>
    %27 = arith.mulf %24, %24 : vector<8x1xf32>
    %28 = arith.subf %26, %27 : vector<8x1xf32>
    %cst_26 = arith.constant 9.99999974E-6 : f32
    %29 = vector.broadcast %cst_26 : f32 to vector<8x1xf32>
    %30 = arith.addf %28, %29 : vector<8x1xf32>
    %31 = math.rsqrt %30 : vector<8x1xf32>
    %32 = vector.broadcast %24 : vector<8x1xf32> to vector<8x32xf32>
    %33 = arith.subf %17, %32 : vector<8x32xf32>
    %34 = vector.broadcast %31 : vector<8x1xf32> to vector<8x32xf32>
    %35 = vector.broadcast %12 : vector<1x32xf32> to vector<8x32xf32>
    %36 = arith.mulf %34, %35 : vector<8x32xf32>
    %37 = arith.mulf %33, %36 : vector<8x32xf32>
    %38 = vector.broadcast %13 : vector<1x32xf32> to vector<8x32xf32>
    %39 = arith.addf %37, %38 : vector<8x32xf32>
    %c0_27 = arith.constant 0 : index
    %c0_28 = arith.constant 0 : index
    %40 = vector.load %arg4[%c0_27, %c0_28] : memref<8x32xf32, #tpu.memory_space<vmem>>, vector<8x32xf32>
    tpu.vector_store %arg4[%c0_27, %c0_28], %39 {strides = array<i32>} : memref<8x32xf32, #tpu.memory_space<vmem>>, vector<8x32xf32>,
    return
  }
}

</mosaic_0001>

<bundles_post_ra>
// kernel: graph_conv.1
= control target key start
LH: loop header
LB: loop body
LE: loop exit
PB: predicated region body
PF: predicated region fallthrough
CT: control target
= control target key end

     0   :  { %9 = vsyncpa [#allocation4], 0  ;;  %s454_s0 = inlined_call_operand.hbm [shape: f32[2,4,4], index: 0, kind: input, shape index: {}]   ;;  %s455_s1 = inlined_call_operand.hbm [shape: f32[8,16], index: 1, kind: input, shape index: {}]   ;;  %s456_s2 = inlined_call_operand.hbm [shape: f32[16,32], index: 2, kind: input, shape index: {}]   ;;  %s457_s3 = inlined_call_operand.vmem [shape: f32[3,32], index: 3, kind: input, shape index: {}]   ;;  %s458_s4 = inlined_call_operand.hbm [shape: f32[8,32], index: 4, kind: output, shape index: {}]  }
   0x1   :  { %10 = vsyncpa [#allocation7], 0 }
   0x2   :  { %11 = vsyncpa [#allocation5], 0  ;;  %s391_s15 = smov [#allocation6]   ;;  %s392_s17 = smov [#allocation3]  }
   0x3   :  { %s30_s16 = sshll.u32 %s391_s15, 4  ;;  %s17_s18 = sshll.u32 %s392_s17, 4  ;;  %s31_s16 = int_to_ptr.vmem [resolvable:$true] %s30_s16  ;;  %s18_s18 = int_to_ptr.vmem [resolvable:$true] %s17_s18 }
   0x4   :  { %s313_s19 = scalar_lea.vmem %s31_s16, 128  ;;  %p318_p1 = scmp.lt.s32.totalorder %s31_s16, %s31_s16 }
   0x5   :  { %p314_p0 = scmp.ne.s32.totalorder %s31_s16, %s313_s19  ;;  %p319_p2 = scmp.lt.s32.totalorder %s313_s19, %s313_s19 }
   0x7   :  { %p320_p3 = por %p319_p2, %p318_p1 }
   0x9   :  { %p321_p4 = pnand %p320_p3, %p314_p0 }
   0xb   :  { %324 = shalt.err (!%p321_p4)
}
   0xc   :  { %33 = dma.hbm_to_vmem [thread:$0]  %s455_s1, 128, %s31_s16, [#allocation7]  }
   0xd   :  { %s333_s22 = scalar_lea.vmem %s18_s18, 128  ;;  %p338_p6 = scmp.lt.s32.totalorder %s18_s18, %s18_s18 }
   0xe   :  { %p334_p5 = scmp.ne.s32.totalorder %s18_s18, %s333_s22  ;;  %p339_p7 = scmp.lt.s32.totalorder %s333_s22, %s333_s22 }
  0x10   :  { %p340_p8 = por %p339_p7, %p338_p6 }
  0x12   :  { %p341_p9 = pnand %p340_p8, %p334_p5 }
  0x14   :  { %344 = shalt.err (!%p341_p9)
}
  0x15   :  { %s393_s23 = smov 64   ;;  %s394_s24 = smov 4  }
  0x16   :  { %23 = dma.hbm_to_vmem [thread:$0]  %s454_s0, 128, %s18_s18, [#allocation4], %s393_s23, %s393_s23, %s394_s24  }
  0x17   :  { %s395_s27 = smov [#allocation8]  }
  0x18   :  { %s39_s28 = sshll.u32 %s395_s27, 4  ;;  %s40_s28 = int_to_ptr.vmem [resolvable:$true] %s39_s28 }
  0x19   :  { %s353_s29 = scalar_lea.vmem %s40_s28, 256  ;;  %p358_p11 = scmp.lt.s32.totalorder %s40_s28, %s40_s28 }
  0x1a   :  { %p354_p10 = scmp.ne.s32.totalorder %s40_s28, %s353_s29  ;;  %p359_p12 = scmp.lt.s32.totalorder %s353_s29, %s353_s29 }
  0x1c   :  { %p360_p13 = por %p359_p12, %p358_p11 }
  0x1e   :  { %p361_p0 = pnand %p360_p13, %p354_p10 }
  0x20   :  { %364 = shalt.err (!%p361_p0)
}
  0x21   :  { %s396_s1 = smov 128   ;;  %s397_s30 = smov 8  }
  0x22   :  { %45 = dma.hbm_to_vmem [thread:$0]  %s456_s2, 256, %s40_s28, [#allocation7], %s396_s1, %s396_s1, %s397_s30  }
  0x23   :  { %385 = dma.done.wait [#allocation4], 128  }
  0x24   :  { %386 = vsyncadd [#allocation4], 4294967168 }
  0x25   :  { %387 = dma.done.wait [#allocation7], 384  }
  0x26   :  { %388 = vsyncadd [#allocation7], 4294966912  ;;  %vm134_vm0 = vcmask 64512   ;;  %v398_v0 = vmov 0.0   ;;  %vm399_vm1 = vmmov 0   ;;  %vm137_vm2 = vcmask 27648  }
  0x27   :  { %281 = vmatprep.subr.mxu0 %v398_v0  ;;  %285 = vmatprep.mubr.msk.f32.mxu0 %vm399_vm1, %v398_v0  ;;  %135 = vst.msk [vmem:[#allocation2] sm:$0xff] %vm134_vm0, %v398_v0  ;;  %v59_v1 = vld [vmem:[#allocation8 + $0x8] sm:$0xff]  ;;  %v58_v2 = vld [vmem:[#allocation8] sm:$0xff]  ;;  %v57_v3 = vld [vmem:[#allocation6] sm:$0xff]  ;;  %vm60_vm3 = vcmask 130048   ;;  %vm145_vm4 = vcmask 60448  }
  0x28   :  { %288 = vmatprep.subr.mxu1 %v398_v0  ;;  %290 = vmatprep.mubr.msk.f32.mxu1 %vm399_vm1, %v398_v0  ;;  %v140_v4 = vld [vmem:[#allocation3 + $0x4] sm:$0xf]  ;;  %v136_v5 = vld [vmem:[#allocation3] sm:$0xf]  ;;  %v272_v10 = vld [vmem:[%s457_s3] ss:$0 sm:$0xff] }
  0x29   :  { %282 = vmatpush3.msra.mxu0 %v59_v1  ;;  %142 = vrot.lane.b32.xlu0 %v140_v4, %s394_s24  ;;  %138 = vst.msk [vmem:[#allocation2] sm:$0xf] %vm137_vm2, %v136_v5  ;;  %vm228_vm5 = vcmask 261120   ;;  %v274_v24 = vld [vmem:[%s457_s3 + $0x1] ss:$0 sm:$0xff]  ;;  %s400_s11 = smov [#allocation9]  }
  0x2a   :  { %283 = vmatprep.subr.mxu0 %v398_v0  ;;  %v275_v28 = vld [vmem:[%s457_s3 + $0x2] ss:$0 sm:$0xff]  ;;  %s261_s12 = sshll.u32 %s400_s11, 4  ;;  %s262_s12 = int_to_ptr.vmem [resolvable:$true] %s261_s12 }
  0x2b   :  { %284 = vmatpush3.msra.mxu0 %v58_v2  ;;  %s365_s13 = scalar_lea.vmem %s262_s12, 128  ;;  %p370_p2 = scmp.lt.s32.totalorder %s262_s12, %s262_s12 }
  0x2c   :  { %286 = vmatmul.mubr.msk.f32.vlgmr.msra.gmra.mxu0 %vm60_vm3, %v57_v3  ;;  %p366_p1 = scmp.ne.s32.totalorder %s262_s12, %s365_s13  ;;  %p371_p3 = scmp.lt.s32.totalorder %s365_s13, %s365_s13 }
  0x2e   :  { %p372_p4 = por %p371_p3, %p370_p2 }
  0x30   :  { %p373_p5 = pnand %p372_p4, %p366_p1 }
  0x9b   :  { %v143_v6 = vpop.permute.xlu0 %142 }
  0x9c   :  { %146 = vst.msk [vmem:[#allocation2 + $0x4] sm:$0xf] %vm145_vm4, %v143_v6 }
  0xa3   :  { %v150_v7 = vld [vmem:[#allocation2] sm:$0xff] }
  0xec   :  { %v130_v8 = vpop.f32.mrf.mxu0 }
  0xed   :  { %289 = vmatpush3.msra.mxu1 %v130_v8 }
  0xee   :  { %v287_v9 = vpop.f32.mrf.mxu0  ;;  %291 = vmatmul.mubr.msk.f32.vlgmr.msra.gmra.mxu1 %vm134_vm0, %v150_v7 }
 0x1ae   :  { %v224_v11 = vpop.f32.mrf.mxu1 }
 0x1af   :  { %v225_v12 = vadd.f32 %v272_v10, %v224_v11 }
 0x1b0   :  { %v292_v13 = vpop.f32.mrf.mxu1 }
 0x1b1   :  { %v229_v14 = vsel %vm228_vm5, %v225_v12, 0.0  ;;  %v232_v15 = vmul.f32 %v225_v12, %v225_v12 }
 0x1b2   :  { %230 = vadd.xlane.f32.xlu0 %v229_v14 }
 0x1b3   :  { %v233_v16 = vsel %vm228_vm5, %v232_v15, 0.0 }
 0x1b4   :  { %234 = vadd.xlane.f32.xlu1 %v233_v16 }
 0x23b   :  { %v231_v17 = vpop.xlane.xlu0 %230 }
 0x23c   :  { %v236_v18 = vmul.f32 0.03125, %v231_v17 }
 0x23d   :  { %v235_v19 = vpop.xlane.xlu1 %234 }
 0x23e   :  { %v238_v20 = vmul.f32 %v236_v18, %v236_v18  ;;  %v237_v21 = vmul.f32 0.03125, %v235_v19  ;;  %v242_v26 = vsub.f32 %v225_v12, %v236_v18 }
 0x240   :  { %v239_v22 = vsub.f32 %v237_v21, %v238_v20 }
 0x242   :  { %v240_v23 = vadd.f32 1e-05, %v239_v22 }
 0x244   :  { %303 = vrsqrt.f32 %v240_v23 }
 0x251   :  { %v304_v25 = vpop.eup %303 }
 0x252   :  { %v247_v27 = vmul.f32 %v304_v25, %v274_v24 }
 0x254   :  { %v248_v29 = vmul.f32 %v247_v27, %v242_v26 }
 0x256   :  { %v253_v30 = vadd.f32 %v275_v28, %v248_v29 }
 0x258   :  { %254 = vst.msk [vmem:[#allocation9] sm:$0xff] %vm228_vm5, %v253_v30 }
 0x259   :  { %376 = shalt.err (!%p373_p5)
}
 0x25a   :  { %264 = dma.vmem_to_hbm [thread:$0]  %s262_s12, 128, %s458_s4, [#allocation5]  }
 0x25b   :  { %389 = dma.done.wait [#allocation5], 128  }
 0x25c   :  { %390 = vsyncadd [#allocation5], 4294967168 }
 0x25d   :  { %268 = vsyncpa [#allocation4], 1 }
 0x25e   :  { %269 = vsyncpa [#allocation7], 1 }
 0x25f   :  { %270 = vsyncpa [#allocation5], 1 }

</bundles_post_ra>
